<compile_context>
chip_gen: v5e
topology: v5e:2x2
jax: 0.10.0
libtpu: 0.0.40
codegen_flags: <defaults>
</compile_context>

<pallas_src>
from functools import partial

import jax
import jax.numpy as jnp
from jax.experimental import pallas as pl
from jax.experimental.pallas import tpu as pltpu

LEAKY_SLOPE = 0.01   # torch.nn.functional.leaky_relu default
LN_EPS = 1e-5        # torch.nn.LayerNorm default


def _leaky_relu(x):
    return jnp.where(x > 0, x, LEAKY_SLOPE * x)


def _layernorm(x, gamma, beta):
    # Fused single-pass statistics: sum and sum-of-squares together,
    # var = E[x^2] - mean^2 (clamped), keeps the torch eps.
    d = x.shape[-1]
    s = jnp.sum(x, axis=-1, keepdims=True)
    sq = jnp.sum(x * x, axis=-1, keepdims=True)
    mean = s * (1.0 / d)
    var = jnp.maximum(sq * (1.0 / d) - mean * mean, 0.0)
    inv = jax.lax.rsqrt(var + LN_EPS)
    return (x - mean) * inv * gamma + beta


def ff_traj_kernel(seq_ref,
                   w_emb_ref, b_emb_ref,
                   ln1_g_ref, ln1_b_ref,
                   w1_ref, b1_ref, w2_ref, b2_ref,
                   w_last_ref, b_last_ref,
                   ln2_g_ref, ln2_b_ref,
                   out_ref):
    # Matmuls: bf16 operands on the MXU with f32 accumulation.
    # LayerNorm / leaky_relu / bias math stays f32 on the VPU (v5e has no bf16 VPU).
    x = seq_ref[...]                                                   # bf16 (rt, D_in)

    # traj_emb: Linear(tstep_dim, d_model) + leaky_relu (+dropout==identity)
    h = jnp.dot(x, w_emb_ref[...], preferred_element_type=jnp.float32)
    h = _leaky_relu(h + b_emb_ref[...])                                # (rt, d_model) f32

    # FFBlock (n_layers = 1): pre-norm residual MLP, dropout==identity
    hn = _layernorm(h, ln1_g_ref[...], ln1_b_ref[...])
    f = jnp.dot(hn.astype(jnp.bfloat16), w1_ref[...],
                preferred_element_type=jnp.float32)
    f = _leaky_relu(f + b1_ref[...])                                   # (rt, d_ff) f32
    f = jnp.dot(f.astype(jnp.bfloat16), w2_ref[...],
                preferred_element_type=jnp.float32) + b2_ref[...]
    h = h + f                                                          # residual

    # traj_last: Linear(d_model, d_model)
    h = jnp.dot(h.astype(jnp.bfloat16), w_last_ref[...],
                preferred_element_type=jnp.float32) + b_last_ref[...]

    # final LayerNorm (+dropout==identity)
    out_ref[...] = _layernorm(h, ln2_g_ref[...], ln2_b_ref[...]).astype(out_ref.dtype)


def _round_up(x, m):
    return (x + m - 1) // m * m


def _cdiv(a, b):
    return -(-a // b)


def _select_row_tile(rows, d_ff, requested):
    """Pick the row tile: bf16-friendly (mult of 16), MXU-friendly (mult of 128)
    when large, bounded intermediate footprint, and an even grid when >1 so the
    v7x megacore splits the single 'parallel' axis evenly."""
    g = 16  # bf16 sublane-pack granularity
    rt = max(g, min(requested, _round_up(rows, g)))
    # Cap the widest live f32 intermediate (rt, d_ff) at 16 MiB.
    while rt > g and rt * d_ff * 4 > 16 * 1024 * 1024:
        rt //= 2
    gran = 128 if rt >= 128 else g
    rt = max(g, (rt // gran) * gran)
    grid = _cdiv(rows, rt)
    if grid > 1 and grid % 2 == 1:
        rt2 = max(g, _round_up(_cdiv(rows, grid + 1), gran))
        if _cdiv(rows, rt2) % 2 == 0:
            rt = rt2
    return rt, _round_up(rows, rt)


def _vmem_limit_bytes(rt, d_in, d_model, d_ff):
    bf16, f32 = 2, 4
    weights = bf16 * (d_in * d_model + d_model * d_ff + d_ff * d_model + d_model * d_model)
    vecs = f32 * (8 * d_model + d_ff)
    tiles = 2 * (rt * d_in * bf16 + rt * d_model * f32)     # double-buffered in/out tiles
    interm = f32 * rt * (d_ff + 4 * d_model)                # live f32 intermediates
    need = 2 * weights + vecs + tiles + interm              # weights double-buffered by default
    return int(min(max(2 * need, 16 << 20), 32 << 20))      # clamp: >v5e default, safe on v7x


def prepare_params(params):
    """One-time weight cast to bf16 (do this at init, not per forward call)."""
    p = dict(params)
    for k in ("w_emb", "w1", "w2", "w_last"):
        p[k] = params[k].astype(jnp.bfloat16)
    return p


@partial(jax.jit, static_argnames=("row_tile", "out_dtype"))
def _ff_traj_forward(seq, params, row_tile=512, out_dtype=jnp.float32):
    B, L, D_in = seq.shape
    d_model = params["w_emb"].shape[1]
    d_ff = params["w1"].shape[1]
    rows = B * L

    rt, rows_p = _select_row_tile(rows, d_ff, row_tile)
    grid = rows_p // rt

    # Stream rows as bf16 (MXU input dtype), feature dim on lanes.
    x2d = seq.reshape(rows, D_in).astype(jnp.bfloat16)
    if rows_p != rows:
        x2d = jnp.pad(x2d, ((0, rows_p - rows), (0, 0)))

    # No-ops if params were already prepared via prepare_params().
    w_emb = params["w_emb"].astype(jnp.bfloat16)
    w1 = params["w1"].astype(jnp.bfloat16)
    w2 = params["w2"].astype(jnp.bfloat16)
    w_last = params["w_last"].astype(jnp.bfloat16)

    def const(shape):
        # Constant-index resident weights / vectors (same block every grid step).
        return pl.BlockSpec(shape, lambda i: (0,) * len(shape))

    out2d = pl.pallas_call(
        ff_traj_kernel,
        out_shape=jax.ShapeDtypeStruct((rows_p, d_model), out_dtype),
        grid_spec=pltpu.PrefetchScalarGridSpec(
            num_scalar_prefetch=0,
            grid=(grid,),
            in_specs=[
                pl.BlockSpec((rt, D_in), lambda i: (i, 0)),        # streamed seq rows (bf16)
                const((D_in, d_model)), const((1, d_model)),       # traj_emb
                const((1, d_model)), const((1, d_model)),          # FFBlock norm
                const((d_model, d_ff)), const((1, d_ff)),          # FFBlock linear1
                const((d_ff, d_model)), const((1, d_model)),       # FFBlock linear2
                const((d_model, d_model)), const((1, d_model)),    # traj_last
                const((1, d_model)), const((1, d_model)),          # final norm
            ],
            out_specs=pl.BlockSpec((rt, d_model), lambda i: (i, 0)),
        ),
        compiler_params=pltpu.CompilerParams(
            dimension_semantics=("parallel",),
            vmem_limit_bytes=_vmem_limit_bytes(rt, D_in, d_model, d_ff)),
    )(x2d,
      w_emb, params["b_emb"],
      params["ln1_g"], params["ln1_b"],
      w1, params["b1"], w2, params["b2"],
      w_last, params["b_last"],
      params["ln2_g"], params["ln2_b"])

    return out2d[:rows].reshape(B, L, d_model)


def ff_traj_encoder_forward(seq, params, hidden_state=None, *,
                            row_tile=512, out_dtype=jnp.float32):
    """seq: (batch, seq_len, tstep_dim). Returns (out (batch, seq_len, d_model), hidden_state)."""
    out = _ff_traj_forward(seq, params, row_tile=row_tile, out_dtype=out_dtype)
    return out, hidden_state


def reference_forward(seq, p):
    """Pure-JAX reference with the same mixed precision as the kernel
    (bf16 matmul inputs, f32 accumulation, f32 LayerNorm/activation)."""
    bf = jnp.bfloat16
    B, L, D_in = seq.shape
    x = seq.reshape(B * L, D_in)
    h = jnp.dot(x.astype(bf), p["w_emb"].astype(bf),
                preferred_element_type=jnp.float32)
    h = _leaky_relu(h + p["b_emb"])
    hn = _layernorm(h, p["ln1_g"], p["ln1_b"])
    f = jnp.dot(hn.astype(bf), p["w1"].astype(bf),
                preferred_element_type=jnp.float32)
    f = _leaky_relu(f + p["b1"])
    f = jnp.dot(f.astype(bf), p["w2"].astype(bf),
                preferred_element_type=jnp.float32) + p["b2"]
    h = h + f
    h = jnp.dot(h.astype(bf), p["w_last"].astype(bf),
                preferred_element_type=jnp.float32) + p["b_last"]
    out = _layernorm(h, p["ln2_g"], p["ln2_b"])
    return out.reshape(B, L, -1)


def init_params(key, tstep_dim, d_model, d_ff):
    ks = jax.random.split(key, 6)
    scale = 0.05
    return {
        "w_emb": scale * jax.random.normal(ks[0], (tstep_dim, d_model), jnp.float32),
        "b_emb": scale * jax.random.normal(ks[1], (1, d_model), jnp.float32),
        "ln1_g": jnp.ones((1, d_model), jnp.float32),
        "ln1_b": jnp.zeros((1, d_model), jnp.float32),
        "w1": scale * jax.random.normal(ks[2], (d_model, d_ff), jnp.float32),
        "b1": scale * jax.random.normal(ks[3], (1, d_ff), jnp.float32),
        "w2": scale * jax.random.normal(ks[4], (d_ff, d_model), jnp.float32),
        "b2": jnp.zeros((1, d_model), jnp.float32),
        "w_last": scale * jax.random.normal(ks[5], (d_model, d_model), jnp.float32),
        "b_last": jnp.zeros((1, d_model), jnp.float32),
        "ln2_g": jnp.ones((1, d_model), jnp.float32),
        "ln2_b": jnp.zeros((1, d_model), jnp.float32),
    }


if __name__ == "__main__":
    # Small shapes consistent with FFTrajEncoder: seq = (batch, seq_len, tstep_dim)
    batch, seq_len, tstep_dim = 2, 8, 16
    d_model, d_ff = 32, 128   # d_ff = 4 * d_model (module default), n_layers = 1

    key = jax.random.PRNGKey(0)
    k_seq, k_par = jax.random.split(key)
    seq = jax.random.normal(k_seq, (batch, seq_len, tstep_dim), jnp.float32)
    params = prepare_params(init_params(k_par, tstep_dim, d_model, d_ff))

    out, hidden = ff_traj_encoder_forward(seq, params, hidden_state=True)
    out = jax.block_until_ready(out)

    ref = reference_forward(seq, params)
    assert out.shape == (batch, seq_len, d_model)
    assert hidden is True
    assert bool(jnp.allclose(out, ref, atol=2e-3, rtol=2e-3)), "mismatch vs JAX reference"

    print("KERNEL_OK")
</pallas_src>

<mosaic_0001>
module attributes {stable_mosaic.version = 11 : i64} {
  func.func @ff_traj_kernel(%arg0: i32, %arg1: memref<16x16xbf16, #tpu.memory_space<vmem>>, %arg2: memref<16x32xbf16, #tpu.memory_space<vmem>>, %arg3: memref<1x32xf32, #tpu.memory_space<vmem>>, %arg4: memref<1x32xf32, #tpu.memory_space<vmem>>, %arg5: memref<1x32xf32, #tpu.memory_space<vmem>>, %arg6: memref<32x128xbf16, #tpu.memory_space<vmem>>, %arg7: memref<1x128xf32, #tpu.memory_space<vmem>>, %arg8: memref<128x32xbf16, #tpu.memory_space<vmem>>, %arg9: memref<1x32xf32, #tpu.memory_space<vmem>>, %arg10: memref<32x32xbf16, #tpu.memory_space<vmem>>, %arg11: memref<1x32xf32, #tpu.memory_space<vmem>>, %arg12: memref<1x32xf32, #tpu.memory_space<vmem>>, %arg13: memref<1x32xf32, #tpu.memory_space<vmem>>, %arg14: memref<16x32xf32, #tpu.memory_space<vmem>>) attributes {dimension_semantics = [#tpu.dimension_semantics<parallel>], iteration_bounds = array<i64: 1>, scalar_prefetch = 0 : i64, scratch_operands = 0 : i64, tpu.core_type = #tpu.core_type<tc>, window_params = [{transform_indices = @transform_0, window_bounds = array<i64: 16, 16>}, {pipeline_mode = #tpu.pipeline_mode<synchronous>, transform_indices = @transform_1, window_bounds = array<i64: 16, 32>}, {pipeline_mode = #tpu.pipeline_mode<synchronous>, transform_indices = @transform_2, window_bounds = array<i64: 1, 32>}, {pipeline_mode = #tpu.pipeline_mode<synchronous>, transform_indices = @transform_3, window_bounds = array<i64: 1, 32>}, {pipeline_mode = #tpu.pipeline_mode<synchronous>, transform_indices = @transform_4, window_bounds = array<i64: 1, 32>}, {pipeline_mode = #tpu.pipeline_mode<synchronous>, transform_indices = @transform_5, window_bounds = array<i64: 32, 128>}, {pipeline_mode = #tpu.pipeline_mode<synchronous>, transform_indices = @transform_6, window_bounds = array<i64: 1, 128>}, {pipeline_mode = #tpu.pipeline_mode<synchronous>, transform_indices = @transform_7, window_bounds = array<i64: 128, 32>}, {pipeline_mode = #tpu.pipeline_mode<synchronous>, transform_indices = @transform_8, window_bounds = array<i64: 1, 32>}, {pipeline_mode = #tpu.pipeline_mode<synchronous>, transform_indices = @transform_9, window_bounds = array<i64: 32, 32>}, {pipeline_mode = #tpu.pipeline_mode<synchronous>, transform_indices = @transform_10, window_bounds = array<i64: 1, 32>}, {pipeline_mode = #tpu.pipeline_mode<synchronous>, transform_indices = @transform_11, window_bounds = array<i64: 1, 32>}, {pipeline_mode = #tpu.pipeline_mode<synchronous>, transform_indices = @transform_12, window_bounds = array<i64: 1, 32>}, {transform_indices = @transform_13, window_bounds = array<i64: 16, 32>}]} {
    %c0 = arith.constant 0 : index
    %c0_0 = arith.constant 0 : index
    %0 = vector.load %arg1[%c0, %c0_0] : memref<16x16xbf16, #tpu.memory_space<vmem>>, vector<16x16xbf16>
    %c0_1 = arith.constant 0 : index
    %c0_2 = arith.constant 0 : index
    %1 = vector.load %arg2[%c0_1, %c0_2] : memref<16x32xbf16, #tpu.memory_space<vmem>>, vector<16x32xbf16>
    %cst = arith.constant dense<0.000000e+00> : vector<16x32xf32>
    %2 = tpu.matmul %0, %1, %cst {dimension_numbers = #tpu.dot_dimension_numbers<[1], [0], [0], [1], [0, 0, 1, 1], [], []>} : vector<16x16xbf16>, vector<16x32xbf16>, vector<16x32xf32> -> vector<16x32xf32>
    %c0_3 = arith.constant 0 : index
    %c0_4 = arith.constant 0 : index
    %3 = vector.load %arg3[%c0_3, %c0_4] : memref<1x32xf32, #tpu.memory_space<vmem>>, vector<1x32xf32>
    %4 = vector.broadcast %3 : vector<1x32xf32> to vector<16x32xf32>
    %5 = arith.addf %2, %4 : vector<16x32xf32>
    %cst_5 = arith.constant 0.000000e+00 : f32
    %6 = vector.broadcast %cst_5 : f32 to vector<16x32xf32>
    %7 = arith.cmpf ogt, %5, %6 : vector<16x32xf32>
    %cst_6 = arith.constant 0.00999999977 : f32
    %8 = vector.broadcast %cst_6 : f32 to vector<16x32xf32>
    %9 = arith.mulf %8, %5 : vector<16x32xf32>
    %10 = arith.select %7, %5, %9 : vector<16x32xi1>, vector<16x32xf32>
    %c0_7 = arith.constant 0 : index
    %c0_8 = arith.constant 0 : index
    %11 = vector.load %arg4[%c0_7, %c0_8] : memref<1x32xf32, #tpu.memory_space<vmem>>, vector<1x32xf32>
    %c0_9 = arith.constant 0 : index
    %c0_10 = arith.constant 0 : index
    %12 = vector.load %arg5[%c0_9, %c0_10] : memref<1x32xf32, #tpu.memory_space<vmem>>, vector<1x32xf32>
    %cst_11 = arith.constant dense<0.000000e+00> : vector<16xf32>
    %13 = vector.multi_reduction <add>, %10, %cst_11 [1] : vector<16x32xf32> to vector<16xf32>
    %14 = vector.shape_cast %13 : vector<16xf32> to vector<16x1xf32>
    %15 = arith.mulf %10, %10 : vector<16x32xf32>
    %cst_12 = arith.constant dense<0.000000e+00> : vector<16xf32>
    %16 = vector.multi_reduction <add>, %15, %cst_12 [1] : vector<16x32xf32> to vector<16xf32>
    %17 = vector.shape_cast %16 : vector<16xf32> to vector<16x1xf32>
    %cst_13 = arith.constant 3.125000e-02 : f32
    %18 = vector.broadcast %cst_13 : f32 to vector<16x1xf32>
    %19 = arith.mulf %14, %18 : vector<16x1xf32>
    %cst_14 = arith.constant 3.125000e-02 : f32
    %20 = vector.broadcast %cst_14 : f32 to vector<16x1xf32>
    %21 = arith.mulf %17, %20 : vector<16x1xf32>
    %22 = arith.mulf %19, %19 : vector<16x1xf32>
    %23 = arith.subf %21, %22 : vector<16x1xf32>
    %cst_15 = arith.constant 0.000000e+00 : f32
    %24 = vector.broadcast %cst_15 : f32 to vector<16x1xf32>
    %25 = arith.maximumf %23, %24 : vector<16x1xf32>
    %cst_16 = arith.constant 9.99999974E-6 : f32
    %26 = vector.broadcast %cst_16 : f32 to vector<16x1xf32>
    %27 = arith.addf %25, %26 : vector<16x1xf32>
    %28 = math.rsqrt %27 : vector<16x1xf32>
    %29 = vector.broadcast %19 : vector<16x1xf32> to vector<16x32xf32>
    %30 = arith.subf %10, %29 : vector<16x32xf32>
    %31 = vector.broadcast %28 : vector<16x1xf32> to vector<16x32xf32>
    %32 = arith.mulf %30, %31 : vector<16x32xf32>
    %33 = vector.broadcast %11 : vector<1x32xf32> to vector<16x32xf32>
    %34 = arith.mulf %32, %33 : vector<16x32xf32>
    %35 = vector.broadcast %12 : vector<1x32xf32> to vector<16x32xf32>
    %36 = arith.addf %34, %35 : vector<16x32xf32>
    %37 = arith.truncf %36 : vector<16x32xf32> to vector<16x32xbf16>
    %c0_17 = arith.constant 0 : index
    %c0_18 = arith.constant 0 : index
    %38 = vector.load %arg6[%c0_17, %c0_18] : memref<32x128xbf16, #tpu.memory_space<vmem>>, vector<32x128xbf16>
    %cst_19 = arith.constant dense<0.000000e+00> : vector<16x128xf32>
    %39 = tpu.matmul %37, %38, %cst_19 {dimension_numbers = #tpu.dot_dimension_numbers<[1], [0], [0], [1], [0, 0, 1, 1], [], []>} : vector<16x32xbf16>, vector<32x128xbf16>, vector<16x128xf32> -> vector<16x128xf32>
    %c0_20 = arith.constant 0 : index
    %c0_21 = arith.constant 0 : index
    %40 = vector.load %arg7[%c0_20, %c0_21] : memref<1x128xf32, #tpu.memory_space<vmem>>, vector<1x128xf32>
    %41 = vector.broadcast %40 : vector<1x128xf32> to vector<16x128xf32>
    %42 = arith.addf %39, %41 : vector<16x128xf32>
    %cst_22 = arith.constant 0.000000e+00 : f32
    %43 = vector.broadcast %cst_22 : f32 to vector<16x128xf32>
    %44 = arith.cmpf ogt, %42, %43 : vector<16x128xf32>
    %cst_23 = arith.constant 0.00999999977 : f32
    %45 = vector.broadcast %cst_23 : f32 to vector<16x128xf32>
    %46 = arith.mulf %45, %42 : vector<16x128xf32>
    %47 = arith.select %44, %42, %46 : vector<16x128xi1>, vector<16x128xf32>
    %48 = arith.truncf %47 : vector<16x128xf32> to vector<16x128xbf16>
    %c0_24 = arith.constant 0 : index
    %c0_25 = arith.constant 0 : index
    %49 = vector.load %arg8[%c0_24, %c0_25] : memref<128x32xbf16, #tpu.memory_space<vmem>>, vector<128x32xbf16>
    %cst_26 = arith.constant dense<0.000000e+00> : vector<16x32xf32>
    %50 = tpu.matmul %48, %49, %cst_26 {dimension_numbers = #tpu.dot_dimension_numbers<[1], [0], [0], [1], [0, 0, 1, 1], [], []>} : vector<16x128xbf16>, vector<128x32xbf16>, vector<16x32xf32> -> vector<16x32xf32>
    %c0_27 = arith.constant 0 : index
    %c0_28 = arith.constant 0 : index
    %51 = vector.load %arg9[%c0_27, %c0_28] : memref<1x32xf32, #tpu.memory_space<vmem>>, vector<1x32xf32>
    %52 = vector.broadcast %51 : vector<1x32xf32> to vector<16x32xf32>
    %53 = arith.addf %50, %52 : vector<16x32xf32>
    %54 = arith.addf %10, %53 : vector<16x32xf32>
    %55 = arith.truncf %54 : vector<16x32xf32> to vector<16x32xbf16>
    %c0_29 = arith.constant 0 : index
    %c0_30 = arith.constant 0 : index
    %56 = vector.load %arg10[%c0_29, %c0_30] : memref<32x32xbf16, #tpu.memory_space<vmem>>, vector<32x32xbf16>
    %cst_31 = arith.constant dense<0.000000e+00> : vector<16x32xf32>
    %57 = tpu.matmul %55, %56, %cst_31 {dimension_numbers = #tpu.dot_dimension_numbers<[1], [0], [0], [1], [0, 0, 1, 1], [], []>} : vector<16x32xbf16>, vector<32x32xbf16>, vector<16x32xf32> -> vector<16x32xf32>
    %c0_32 = arith.constant 0 : index
    %c0_33 = arith.constant 0 : index
    %58 = vector.load %arg11[%c0_32, %c0_33] : memref<1x32xf32, #tpu.memory_space<vmem>>, vector<1x32xf32>
    %59 = vector.broadcast %58 : vector<1x32xf32> to vector<16x32xf32>
    %60 = arith.addf %57, %59 : vector<16x32xf32>
    %c0_34 = arith.constant 0 : index
    %c0_35 = arith.constant 0 : index
    %61 = vector.load %arg12[%c0_34, %c0_35] : memref<1x32xf32, #tpu.memory_space<vmem>>, vector<1x32xf32>
    %c0_36 = arith.constant 0 : index
    %c0_37 = arith.constant 0 : index
    %62 = vector.load %arg13[%c0_36, %c0_37] : memref<1x32xf32, #tpu.memory_space<vmem>>, vector<1x32xf32>
    %cst_38 = arith.constant dense<0.000000e+00> : vector<16xf32>
    %63 = vector.multi_reduction <add>, %60, %cst_38 [1] : vector<16x32xf32> to vector<16xf32>
    %64 = vector.shape_cast %63 : vector<16xf32> to vector<16x1xf32>
    %65 = arith.mulf %60, %60 : vector<16x32xf32>
    %cst_39 = arith.constant dense<0.000000e+00> : vector<16xf32>
    %66 = vector.multi_reduction <add>, %65, %cst_39 [1] : vector<16x32xf32> to vector<16xf32>
    %67 = vector.shape_cast %66 : vector<16xf32> to vector<16x1xf32>
    %cst_40 = arith.constant 3.125000e-02 : f32
    %68 = vector.broadcast %cst_40 : f32 to vector<16x1xf32>
    %69 = arith.mulf %64, %68 : vector<16x1xf32>
    %cst_41 = arith.constant 3.125000e-02 : f32
    %70 = vector.broadcast %cst_41 : f32 to vector<16x1xf32>
    %71 = arith.mulf %67, %70 : vector<16x1xf32>
    %72 = arith.mulf %69, %69 : vector<16x1xf32>
    %73 = arith.subf %71, %72 : vector<16x1xf32>
    %cst_42 = arith.constant 0.000000e+00 : f32
    %74 = vector.broadcast %cst_42 : f32 to vector<16x1xf32>
    %75 = arith.maximumf %73, %74 : vector<16x1xf32>
    %cst_43 = arith.constant 9.99999974E-6 : f32
    %76 = vector.broadcast %cst_43 : f32 to vector<16x1xf32>
    %77 = arith.addf %75, %76 : vector<16x1xf32>
    %78 = math.rsqrt %77 : vector<16x1xf32>
    %79 = vector.broadcast %69 : vector<16x1xf32> to vector<16x32xf32>
    %80 = arith.subf %60, %79 : vector<16x32xf32>
    %81 = vector.broadcast %78 : vector<16x1xf32> to vector<16x32xf32>
    %82 = arith.mulf %80, %81 : vector<16x32xf32>
    %83 = vector.broadcast %61 : vector<1x32xf32> to vector<16x32xf32>
    %84 = arith.mulf %82, %83 : vector<16x32xf32>
    %85 = vector.broadcast %62 : vector<1x32xf32> to vector<16x32xf32>
    %86 = arith.addf %84, %85 : vector<16x32xf32>
    %c0_44 = arith.constant 0 : index
    %c0_45 = arith.constant 0 : index
    %87 = vector.load %arg14[%c0_44, %c0_45] : memref<16x32xf32, #tpu.memory_space<vmem>>, vector<16x32xf32>
    tpu.vector_store %arg14[%c0_44, %c0_45], %86 {strides = array<i32>} : memref<16x32xf32, #tpu.memory_space<vmem>>, vector<16x32xf32>,
    return
  }
  func.func @transform_0(%arg0: i32) -> (i32, i32) {
    %c0_i32 = arith.constant 0 : i32
    %c0_i32_0 = arith.constant 0 : i32
    return %arg0, %c0_i32 : i32, i32
  }
  func.func @transform_1(%arg0: i32) -> (i32, i32) {
    %c0_i32 = arith.constant 0 : i32
    %c0_i32_0 = arith.constant 0 : i32
    %c0_i32_1 = arith.constant 0 : i32
    return %c0_i32, %c0_i32_0 : i32, i32
  }
  func.func @transform_2(%arg0: i32) -> (i32, i32) {
    %c0_i32 = arith.constant 0 : i32
    %c0_i32_0 = arith.constant 0 : i32
    %c0_i32_1 = arith.constant 0 : i32
    return %c0_i32, %c0_i32_0 : i32, i32
  }
  func.func @transform_3(%arg0: i32) -> (i32, i32) {
    %c0_i32 = arith.constant 0 : i32
    %c0_i32_0 = arith.constant 0 : i32
    %c0_i32_1 = arith.constant 0 : i32
    return %c0_i32, %c0_i32_0 : i32, i32
  }
  func.func @transform_4(%arg0: i32) -> (i32, i32) {
    %c0_i32 = arith.constant 0 : i32
    %c0_i32_0 = arith.constant 0 : i32
    %c0_i32_1 = arith.constant 0 : i32
    return %c0_i32, %c0_i32_0 : i32, i32
  }
  func.func @transform_5(%arg0: i32) -> (i32, i32) {
    %c0_i32 = arith.constant 0 : i32
    %c0_i32_0 = arith.constant 0 : i32
    %c0_i32_1 = arith.constant 0 : i32
    return %c0_i32, %c0_i32_0 : i32, i32
  }
  func.func @transform_6(%arg0: i32) -> (i32, i32) {
    %c0_i32 = arith.constant 0 : i32
    %c0_i32_0 = arith.constant 0 : i32
    %c0_i32_1 = arith.constant 0 : i32
    return %c0_i32, %c0_i32_0 : i32, i32
  }
  func.func @transform_7(%arg0: i32) -> (i32, i32) {
    %c0_i32 = arith.constant 0 : i32
    %c0_i32_0 = arith.constant 0 : i32
    %c0_i32_1 = arith.constant 0 : i32
    return %c0_i32, %c0_i32_0 : i32, i32
  }
  func.func @transform_8(%arg0: i32) -> (i32, i32) {
    %c0_i32 = arith.constant 0 : i32
    %c0_i32_0 = arith.constant 0 : i32
    %c0_i32_1 = arith.constant 0 : i32
    return %c0_i32, %c0_i32_0 : i32, i32
  }
  func.func @transform_9(%arg0: i32) -> (i32, i32) {
    %c0_i32 = arith.constant 0 : i32
    %c0_i32_0 = arith.constant 0 : i32
    %c0_i32_1 = arith.constant 0 : i32
    return %c0_i32, %c0_i32_0 : i32, i32
  }
  func.func @transform_10(%arg0: i32) -> (i32, i32) {
    %c0_i32 = arith.constant 0 : i32
    %c0_i32_0 = arith.constant 0 : i32
    %c0_i32_1 = arith.constant 0 : i32
    return %c0_i32, %c0_i32_0 : i32, i32
  }
  func.func @transform_11(%arg0: i32) -> (i32, i32) {
    %c0_i32 = arith.constant 0 : i32
    %c0_i32_0 = arith.constant 0 : i32
    %c0_i32_1 = arith.constant 0 : i32
    return %c0_i32, %c0_i32_0 : i32, i32
  }
  func.func @transform_12(%arg0: i32) -> (i32, i32) {
    %c0_i32 = arith.constant 0 : i32
    %c0_i32_0 = arith.constant 0 : i32
    %c0_i32_1 = arith.constant 0 : i32
    return %c0_i32, %c0_i32_0 : i32, i32
  }
  func.func @transform_13(%arg0: i32) -> (i32, i32) {
    %c0_i32 = arith.constant 0 : i32
    %c0_i32_0 = arith.constant 0 : i32
    return %arg0, %c0_i32 : i32, i32
  }
}

</mosaic_0001>

<bundles_post_ra>
// kernel: _ff_traj_forward.1
= control target key start
LH: loop header
LB: loop body
LE: loop exit
PB: predicated region body
PF: predicated region fallthrough
CT: control target
= control target key end

     0   :  { %vm65_vm0 = vcmask 130048   ;;  %s687_s0 = inlined_call_operand.vmem [shape: bf16[16,16], index: 0, kind: input, shape index: {}]   ;;  %s688_s1 = inlined_call_operand.vmem [shape: bf16[16,32], index: 1, kind: input, shape index: {}]   ;;  %s689_s2 = inlined_call_operand.vmem [shape: f32[1,32], index: 2, kind: input, shape index: {}]   ;;  %s690_s3 = inlined_call_operand.vmem [shape: f32[1,32], index: 3, kind: input, shape index: {}]   ;;  %s691_s4 = inlined_call_operand.vmem [shape: f32[1,32], index: 4, kind: input, shape index: {}]   ;;  %s692_s5 = inlined_call_operand.vmem [shape: bf16[32,128], index: 5, kind: input, shape index: {}]   ;;  %s693_s6 = inlined_call_operand.vmem [shape: f32[1,128], index: 6, kind: input, shape index: {}]   ;;  %s694_s7 = inlined_call_operand.vmem [shape: bf16[128,32], index: 7, kind: input, shape index: {}]   ;;  %s695_s8 = inlined_call_operand.vmem [shape: f32[1,32], index: 8, kind: input, shape index: {}]   ;;  %s696_s9 = inlined_call_operand.vmem [shape: bf16[32,32], index: 9, kind: input, shape index: {}]   ;;  %s697_s10 = inlined_call_operand.vmem [shape: f32[1,32], index: 10, kind: input, shape index: {}]   ;;  %s698_s11 = inlined_call_operand.vmem [shape: f32[1,32], index: 11, kind: input, shape index: {}]   ;;  %s699_s12 = inlined_call_operand.vmem [shape: f32[1,32], index: 12, kind: input, shape index: {}]   ;;  %s700_s13 = inlined_call_operand.hbm [shape: f32[16,32], index: 13, kind: output, shape index: {}]  }
   0x1   :  { %v461_v0 = vld [vmem:[%s688_s1] sm:$0xff] }
   0x2   :  { %v460_v1 = vld [vmem:[%s687_s0] sm:$0xff]  ;;  %76 = vmatpush.bf16.msra.mxu0 %v461_v0 }
   0x3   :  { %18 = vsyncpa [#allocation3], 0  ;;  %v477_v2 = vld [vmem:[%s689_s2] ss:$0 sm:$0xff]  ;;  %vm91_vm2 = vcmask 261120   ;;  %v463_v22 = vld [vmem:[%s692_s5 + $0x8] sm:$0xff] }
   0x4   :  { %182 = vmatpush.bf16.msra.mxu1 %v463_v22  ;;  %v462_v24 = vld [vmem:[%s692_s5] sm:$0xff]  ;;  %v471_v33 = vld [vmem:[%s694_s7 + $0x38] sm:$0xff]  ;;  %v470_v35 = vld [vmem:[%s694_s7 + $0x30] sm:$0xff]  ;;  %s389_s23 = sshll.u32 %s700_s13, 4  ;;  %s521_s24 = smov 8   ;;  %s390_s23 = int_to_ptr.hbm [resolvable:$true] %s389_s23 }
   0x5   :  { %409 = vmatmul.msk.bf16.vlgmr.msra.gmra.mxu0 %vm65_vm0, %v460_v1  ;;  %265 = vmatpush.bf16.msra.mxu2 %v471_v33  ;;  %v469_v40 = vld [vmem:[%s694_s7 + $0x28] sm:$0xff]  ;;  %v468_v43 = vld [vmem:[%s694_s7 + $0x20] sm:$0xff]  ;;  %v467_v0 = vld [vmem:[%s694_s7 + $0x18] sm:$0xff] }
   0x6   :  { %v478_v53 = vld [vmem:[%s690_s3] ss:$0 sm:$0xff]  ;;  %v466_v1 = vld [vmem:[%s694_s7 + $0x10] sm:$0xff] }
   0x7   :  { %v479_v59 = vld [vmem:[%s691_s4] ss:$0 sm:$0xff] }
   0x8   :  { %183 = vmatpush.bf16.msra.mxu1 %v462_v24 }
   0x9   :  { %266 = vmatpush.bf16.msra.mxu2 %v470_v35 }
   0xd   :  { %267 = vmatpush.bf16.msra.mxu2 %v469_v40 }
  0x11   :  { %268 = vmatpush.bf16.msra.mxu2 %v468_v43 }
  0x15   :  { %269 = vmatpush.bf16.msra.mxu2 %v467_v0  ;;  %v484_v0 = vld [vmem:[%s699_s12] ss:$0 sm:$0xff]  ;;  %s520_s12 = smov 128  }
  0x19   :  { %270 = vmatpush.bf16.msra.mxu2 %v466_v1 }
  0x82   :  { %v78_v3 = vpop.f32.mrf.mxu0 }
  0x83   :  { %v79_v4 = vadd.f32 %v477_v2, %v78_v3  ;;  %v464_v3 = vld [vmem:[%s694_s7] sm:$0xff] }
  0x85   :  { %vm83_vm1 = vcmp.gt.f32.partialorder %v79_v4, 0.0  ;;  %v85_v5 = vmul.f32 0.01, %v79_v4 }
  0x87   :  { %v601_v6 = vsel %vm83_vm1, %v79_v4, %v85_v5  ;;  %v480_v5 = vld [vmem:[%s693_s6] ss:$0 sm:$0xff] }
  0x88   :  { %v92_v7 = vsel %vm91_vm2, %v601_v6, 0.0  ;;  %v98_v8 = vmul.f32 %v601_v6, %v601_v6 }
  0x89   :  { %93 = vadd.xlane.f32.xlu0 %v92_v7 }
  0x8a   :  { %v80_v9 = vpop.f32.mrf.mxu0  ;;  %v100_v10 = vsel %vm91_vm2, %v98_v8, 0.0 }
  0x8b   :  { %v81_v11 = vadd.f32 %v477_v2, %v80_v9  ;;  %101 = vadd.xlane.f32.xlu1 %v100_v10  ;;  %v465_v2 = vld [vmem:[%s694_s7 + $0x8] sm:$0xff] }
  0x8c   :  { %271 = vmatpush.bf16.msra.mxu2 %v465_v2 }
  0x8d   :  { %vm84_vm3 = vcmp.gt.f32.partialorder %v81_v11, 0.0  ;;  %v86_v12 = vmul.f32 0.01, %v81_v11 }
  0x8f   :  { %v608_v13 = vsel %vm84_vm3, %v81_v11, %v86_v12 }
  0x90   :  { %v95_v14 = vsel %vm91_vm2, %v608_v13, 0.0  ;;  %v99_v15 = vmul.f32 %v608_v13, %v608_v13  ;;  %272 = vmatpush.bf16.msra.mxu2 %v464_v3 }
  0x91   :  { %96 = vadd.xlane.f32.xlu0 %v95_v14 }
  0x92   :  { %v103_v16 = vsel %vm91_vm2, %v99_v15, 0.0 }
  0x93   :  { %104 = vadd.xlane.f32.xlu1 %v103_v16  ;;  %v473_v16 = vld [vmem:[%s696_s9 + $0x8] sm:$0xff] }
  0x94   :  { %311 = vmatpush.bf16.msra.mxu3 %v473_v16 }
  0xfc   :  { %v94_v17 = vpop.xlane.xlu0 %93 }
  0xfd   :  { %v106_v18 = vmul.f32 0.03125, %v94_v17  ;;  %v472_v17 = vld [vmem:[%s696_s9] sm:$0xff] }
  0xfe   :  { %v102_v19 = vpop.xlane.xlu1 %101  ;;  %312 = vmatpush.bf16.msra.mxu3 %v472_v17 }
  0xff   :  { %v110_v20 = vmul.f32 %v106_v18, %v106_v18  ;;  %v108_v21 = vmul.f32 0.03125, %v102_v19  ;;  %v138_v50 = vsub.f32 %v601_v6, %v106_v18  ;;  %v481_v19 = vld [vmem:[%s695_s8] ss:$0 sm:$0xff] }
 0x101   :  { %v112_v23 = vsub.f32 %v108_v21, %v110_v20 }
 0x103   :  { %v114_v25 = vmax.f32 %v112_v23, 0.0 }
 0x104   :  { %v97_v26 = vpop.xlane.xlu0 %96 }
 0x105   :  { %v116_v27 = vadd.f32 1e-05, %v114_v25  ;;  %v107_v28 = vmul.f32 0.03125, %v97_v26  ;;  %v482_v26 = vld [vmem:[%s697_s10] ss:$0 sm:$0xff] }
 0x106   :  { %v105_v29 = vpop.xlane.xlu1 %104 }
 0x107   :  { %485 = vrsqrt.f32 %v116_v27  ;;  %v111_v30 = vmul.f32 %v107_v28, %v107_v28  ;;  %v109_v31 = vmul.f32 0.03125, %v105_v29  ;;  %vm124_vm5 = vweird.f32 %v116_v27 }
 0x108   :  { %v139_v55 = vsub.f32 %v608_v13, %v107_v28 }
 0x109   :  { %v113_v32 = vsub.f32 %v109_v31, %v111_v30 }
 0x10b   :  { %v115_v34 = vmax.f32 %v113_v32, 0.0 }
 0x10d   :  { %v486_v36 = vpop.eup %485  ;;  %v117_v38 = vadd.f32 1e-05, %v115_v34 }
 0x10e   :  { %v119_v37 = vmul.f32 %v486_v36, %v116_v27  ;;  %vm125_vm4 = vweird.f32 %v486_v36 }
 0x10f   :  { %487 = vrsqrt.f32 %v117_v38  ;;  %vm126_vm6 = vmor %vm124_vm5, %vm125_vm4  ;;  %vm134_vm8 = vweird.f32 %v117_v38 }
 0x110   :  { %v120_v39 = vmul.f32 %v486_v36, %v119_v37 }
 0x112   :  { %v121_v41 = vmul.f32 0.5, %v120_v39 }
 0x114   :  { %v122_v42 = vsub.f32 1.5, %v121_v41 }
 0x115   :  { %v488_v44 = vpop.eup %487 }
 0x116   :  { %v123_v45 = vmul.f32 %v486_v36, %v122_v42  ;;  %v129_v46 = vmul.f32 %v488_v44, %v117_v38  ;;  %vm135_vm7 = vweird.f32 %v488_v44 }
 0x117   :  { %vm136_vm9 = vmor %vm134_vm8, %vm135_vm7 }
 0x118   :  { %v130_v47 = vmul.f32 %v488_v44, %v129_v46  ;;  %v127_v49 = vsel %vm126_vm6, %v486_v36, %v123_v45 }
 0x119   :  { %v140_v52 = vmul.f32 %v138_v50, %v127_v49 }
 0x11a   :  { %v131_v48 = vmul.f32 0.5, %v130_v47 }
 0x11b   :  { %v145_v58 = vmul.f32 %v478_v53, %v140_v52 }
 0x11c   :  { %v132_v51 = vsub.f32 1.5, %v131_v48 }
 0x11d   :  { %v150_v61 = vadd.f32 %v479_v59, %v145_v58 }
 0x11e   :  { %v133_v54 = vmul.f32 %v488_v44, %v132_v51 }
 0x120   :  { %v137_v56 = vsel %vm136_vm9, %v488_v44, %v133_v54 }
 0x121   :  { %v141_v57 = vmul.f32 %v139_v55, %v137_v56 }
 0x123   :  { %v146_v60 = vmul.f32 %v478_v53, %v141_v57 }
 0x125   :  { %v151_v62 = vadd.f32 %v479_v59, %v146_v60  ;;  %v483_v59 = vld [vmem:[%s698_s11] ss:$0 sm:$0xff]  ;;  %s519_s11 = smov [#allocation2]  }
 0x126   :  { %s387_s20 = sshll.u32 %s519_s11, 4  ;;  %s388_s20 = int_to_ptr.vmem [resolvable:$true] %s387_s20 }
 0x127   :  { %v152_v63 = vpack.c.bf16 %v151_v62, %v150_v61 }
 0x129   :  { %418 = vmatmul.msk.bf16.vlgmr.msra.gmra.mxu1 %vm91_vm2, %v152_v63 }
 0x1a6   :  { %v185_v4 = vpop.f32.mrf.mxu1 }
 0x1a7   :  { %v186_v7 = vadd.f32 %v480_v5, %v185_v4 }
 0x1a9   :  { %v192_v9 = vmul.f32 0.01, %v186_v7  ;;  %vm190_vm10 = vcmp.gt.f32.partialorder %v186_v7, 0.0 }
 0x1ab   :  { %v194_v12 = vsel %vm190_vm10, %v186_v7, %v192_v9 }
 0x1ae   :  { %v187_v8 = vpop.f32.mrf.mxu1 }
 0x1af   :  { %v188_v10 = vadd.f32 %v480_v5, %v187_v8 }
 0x1b1   :  { %v193_v11 = vmul.f32 0.01, %v188_v10  ;;  %vm191_vm11 = vcmp.gt.f32.partialorder %v188_v10, 0.0 }
 0x1b3   :  { %v195_v14 = vsel %vm191_vm11, %v188_v10, %v193_v11 }
 0x1b4   :  { %v196_v15 = vpack.c.bf16 %v195_v14, %v194_v12 }
 0x1b6   :  { %273 = vmatmul.bf16.vlgmr.msra.gmra.mxu2 %v196_v15 }
 0x239   :  { %v274_v18 = vpop.f32.mrf.mxu2 }
 0x23a   :  { %v275_v20 = vadd.f32 %v481_v19, %v274_v18 }
 0x23c   :  { %v279_v23 = vadd.f32 %v275_v20, %v601_v6 }
 0x241   :  { %v276_v21 = vpop.f32.mrf.mxu2 }
 0x242   :  { %v277_v22 = vadd.f32 %v481_v19, %v276_v21 }
 0x244   :  { %v280_v24 = vadd.f32 %v277_v22, %v608_v13 }
 0x246   :  { %v281_v25 = vpack.c.bf16 %v280_v24, %v279_v23 }
 0x248   :  { %459 = vmatmul.msk.bf16.vlgmr.msra.gmra.mxu3 %vm91_vm2, %v281_v25 }
 0x2cb   :  { %v314_v27 = vpop.f32.mrf.mxu3 }
 0x2cc   :  { %v315_v28 = vadd.f32 %v482_v26, %v314_v27 }
 0x2ce   :  { %v321_v29 = vsel %vm91_vm2, %v315_v28, 0.0  ;;  %v327_v30 = vmul.f32 %v315_v28, %v315_v28 }
 0x2cf   :  { %322 = vadd.xlane.f32.xlu2 %v321_v29 }
 0x2d0   :  { %v329_v31 = vsel %vm91_vm2, %v327_v30, 0.0 }
 0x2d1   :  { %330 = vadd.xlane.f32.xlu0 %v329_v31 }
 0x2d3   :  { %v316_v32 = vpop.f32.mrf.mxu3 }
 0x2d4   :  { %v317_v6 = vadd.f32 %v482_v26, %v316_v32 }
 0x2d6   :  { %v324_v13 = vsel %vm91_vm2, %v317_v6, 0.0  ;;  %v328_v33 = vmul.f32 %v317_v6, %v317_v6 }
 0x2d7   :  { %325 = vadd.xlane.f32.xlu2 %v324_v13 }
 0x2d8   :  { %v332_v34 = vsel %vm91_vm2, %v328_v33, 0.0 }
 0x2d9   :  { %333 = vadd.xlane.f32.xlu1 %v332_v34 }
 0x342   :  { %v323_v35 = vpop.xlane.xlu2 %322 }
 0x343   :  { %v335_v36 = vmul.f32 0.03125, %v323_v35 }
 0x344   :  { %v331_v37 = vpop.xlane.xlu0 %330 }
 0x345   :  { %v339_v38 = vmul.f32 %v335_v36, %v335_v36  ;;  %v337_v39 = vmul.f32 0.03125, %v331_v37  ;;  %v367_v58 = vsub.f32 %v315_v28, %v335_v36 }
 0x347   :  { %v341_v40 = vsub.f32 %v337_v39, %v339_v38 }
 0x349   :  { %v343_v41 = vmax.f32 %v341_v40, 0.0 }
 0x34a   :  { %v326_v42 = vpop.xlane.xlu2 %325 }
 0x34b   :  { %v345_v43 = vadd.f32 1e-05, %v343_v41  ;;  %v336_v44 = vmul.f32 0.03125, %v326_v42 }
 0x34c   :  { %v334_v45 = vpop.xlane.xlu1 %333 }
 0x34d   :  { %489 = vrsqrt.f32 %v345_v43  ;;  %v340_v46 = vmul.f32 %v336_v44, %v336_v44  ;;  %v338_v47 = vmul.f32 0.03125, %v334_v45  ;;  %vm353_vm13 = vweird.f32 %v345_v43 }
 0x34e   :  { %v368_v7 = vsub.f32 %v317_v6, %v336_v44 }
 0x34f   :  { %v342_v48 = vsub.f32 %v338_v47, %v340_v46 }
 0x351   :  { %v344_v49 = vmax.f32 %v342_v48, 0.0 }
 0x353   :  { %v490_v50 = vpop.eup %489  ;;  %v346_v52 = vadd.f32 1e-05, %v344_v49 }
 0x354   :  { %v348_v51 = vmul.f32 %v490_v50, %v345_v43  ;;  %vm354_vm12 = vweird.f32 %v490_v50 }
 0x355   :  { %491 = vrsqrt.f32 %v346_v52  ;;  %vm355_vm14 = vmor %vm353_vm13, %vm354_vm12  ;;  %vm363_vm0 = vweird.f32 %v346_v52 }
 0x356   :  { %v349_v53 = vmul.f32 %v490_v50, %v348_v51 }
 0x358   :  { %v350_v54 = vmul.f32 0.5, %v349_v53 }
 0x35a   :  { %v351_v55 = vsub.f32 1.5, %v350_v54 }
 0x35b   :  { %v492_v56 = vpop.eup %491 }
 0x35c   :  { %v352_v57 = vmul.f32 %v490_v50, %v351_v55  ;;  %v358_v60 = vmul.f32 %v492_v56, %v346_v52  ;;  %vm364_vm15 = vweird.f32 %v492_v56 }
 0x35d   :  { %vm365_vm1 = vmor %vm363_vm0, %vm364_vm15 }
 0x35e   :  { %v356_v61 = vsel %vm355_vm14, %v490_v50, %v352_v57  ;;  %v359_v63 = vmul.f32 %v492_v56, %v358_v60 }
 0x35f   :  { %v369_v62 = vmul.f32 %v367_v58, %v356_v61 }
 0x360   :  { %v360_v2 = vmul.f32 0.5, %v359_v63 }
 0x361   :  { %v374_v1 = vmul.f32 %v483_v59, %v369_v62 }
 0x362   :  { %v361_v3 = vsub.f32 1.5, %v360_v2 }
 0x363   :  { %v379_v4 = vadd.f32 %v484_v0, %v374_v1 }
 0x364   :  { %v362_v5 = vmul.f32 %v492_v56, %v361_v3 }
 0x365   :  { %381 = vst.msk [vmem:[#allocation2] sm:$0xff] %vm91_vm2, %v379_v4 }
 0x366   :  { %v366_v8 = vsel %vm365_vm1, %v492_v56, %v362_v5 }
 0x367   :  { %v370_v9 = vmul.f32 %v368_v7, %v366_v8 }
 0x369   :  { %v375_v10 = vmul.f32 %v483_v59, %v370_v9 }
 0x36b   :  { %v380_v11 = vadd.f32 %v484_v0, %v375_v10 }
 0x36d   :  { %382 = vst.msk [vmem:[#allocation2 + $0x8] sm:$0xff] %vm91_vm2, %v380_v11 }
 0x36e   :  { %395 = dma.vmem_to_hbm [thread:$0]  %s388_s20, 256, %s390_s23, [#allocation3], %s520_s12, %s520_s12, %s521_s24  }
 0x36f   :  { %517 = dma.done.wait [#allocation3], 256  }
 0x370   :  { %518 = vsyncadd [#allocation3], 4294967040 }
 0x371   :  { %400 = vsyncpa [#allocation3], 1 }

</bundles_post_ra>
